<compile_context>
chip_gen: v5e
topology: v5e:2x2
jax: 0.10.0
libtpu: 0.0.40
codegen_flags: <defaults>
</compile_context>

<pallas_src>
import functools

import jax
import jax.numpy as jnp
import numpy as np
from jax.experimental import pallas as pl
from jax.experimental.pallas import tpu as pltpu


def _temporal_cg_avg_pool_kernel(prev_ref, x_ref, y_ref, act_ref, *,
                                 n_cumulated_values: int):
    # prev_ref: (tb, 1, ts)  previous cumulative sum (zeros on a fresh call)
    # x_ref   : (tb, T, ts)  input tile
    # y_ref   : (tb, T, ts)  causal cumulative average
    # act_ref : (tb, 1, ts)  updated activation (cumulative sum at last frame)
    T = x_ref.shape[1]

    x = x_ref[...].astype(jnp.float32)                       # one dense load
    t_idx = jax.lax.broadcasted_iota(jnp.int32, (1, T, 1), 1)

    # Inclusive prefix sum along the sublane (T) axis: Hillis-Steele scan with
    # ceil(log2 T) passes.  The cross-sublane shift runs on the XLU
    # (pltpu.roll), the masked add on the VPU at full vreg occupancy.
    cs = x
    d = 1
    while d < T:
        mask = (t_idx >= d).astype(jnp.float32)               # (1, T, 1)
        cs = cs + pltpu.roll(cs, shift=d, axis=1) * mask
        d *= 2

    cs = cs + prev_ref[...].astype(jnp.float32)               # carry-in

    inv = 1.0 / (t_idx.astype(jnp.float32)
                 + float(n_cumulated_values + 1))              # (1, T, 1)
    y_ref[...] = (cs * inv).astype(y_ref.dtype)                # one dense store
    act_ref[...] = cs[:, T - 1:T, :].astype(act_ref.dtype)


def temporal_cg_avg_pool_3d(x: jnp.ndarray,
                            activation: jnp.ndarray | None = None,
                            n_cumulated_values: int = 0,
                            *,
                            target_block_bytes: int = 4 << 20):
    """Pallas implementation of TemporalCGAvgPool3D.forward.

    x: (N, C, T, H, W).  Returns (y, new_activation) with y: (N, C, T, H, W)
    and new_activation: (N, C, 1, H, W), mirroring the PyTorch module's output
    and state update (the caller carries `activation` / `n_cumulated_values`).
    """
    N, C, T, H, W = x.shape
    S = H * W
    B = N * C

    xf = x.reshape(B, T, S)                        # contiguous reshape (free)
    if activation is None:
        prevf = jnp.zeros((B, 1, S), dtype=x.dtype)
    else:
        prevf = activation.reshape(B, 1, S).astype(x.dtype)

    itemsize = jnp.dtype(x.dtype).itemsize
    row_bytes = T * S * itemsize

    # Lane (S) tiling: only split S when one batch row alone exceeds the target
    # block (huge H*W) or when B == 1.  S blocks are multiples of 128 lanes so
    # the dominant y store stays an unmasked, lane-dense vst.
    if S >= 256 and (row_bytes > target_block_bytes or B == 1):
        ts = (max(1, target_block_bytes // (T * itemsize)) // 128) * 128
        if B == 1:                                  # give both v7x cores work
            ts = min(ts, pl.cdiv(pl.cdiv(S, 2), 128) * 128)
        ts = max(128, min(ts, (S // 128) * 128))
    else:
        ts = S
    grid_s = pl.cdiv(S, ts)

    # Batch (B) tiling: biggest tile under the target, but keep enough blocks
    # for v7x's two TensorCores / pipelining; prefer a divisor of B so the
    # final block is not ragged (no HBM padding or output slicing either way:
    # a ragged last block simply has its out-of-range writes dropped).
    blk_bytes = T * ts * itemsize
    tb = max(1, min(B, target_block_bytes // blk_bytes))
    min_b_blocks = min(B, max(1, pl.cdiv(8, grid_s)))
    tb = min(tb, pl.cdiv(B, min_b_blocks))
    for d in range(tb, 0, -1):
        if B % d == 0:
            if 4 * d >= 3 * tb:        # accept a divisor within 25% of target
                tb = d
            break
    grid_b = pl.cdiv(B, tb)

    kernel = functools.partial(_temporal_cg_avg_pool_kernel,
                               n_cumulated_values=int(n_cumulated_values))

    n_scan = max(1, int(np.ceil(np.log2(max(T, 2)))))
    bytes_accessed = 2 * (B * T * S + B * S) * itemsize       # read x/prev, write y/act
    cost = pl.CostEstimate(flops=int((2 * n_scan + 3) * B * T * S),
                           transcendentals=0,
                           bytes_accessed=int(bytes_accessed))

    y, act = pl.pallas_call(
        kernel,
        out_shape=(jax.ShapeDtypeStruct((B, T, S), x.dtype),
                   jax.ShapeDtypeStruct((B, 1, S), x.dtype)),
        grid=(grid_b, grid_s),
        in_specs=[
            pl.BlockSpec((tb, 1, ts), lambda i, j: (i, 0, j)),   # previous cumsum
            pl.BlockSpec((tb, T, ts), lambda i, j: (i, 0, j)),   # x tile
        ],
        out_specs=(
            pl.BlockSpec((tb, T, ts), lambda i, j: (i, 0, j)),   # y
            pl.BlockSpec((tb, 1, ts), lambda i, j: (i, 0, j)),   # new activation
        ),
        compiler_params=pltpu.CompilerParams(
            dimension_semantics=("parallel", "parallel"),
            vmem_limit_bytes=48 << 20),
        cost_estimate=cost,
    )(prevf, xf)

    y = y.reshape(N, C, T, H, W)
    new_activation = act.reshape(N, C, 1, H, W)
    # TODO(synk): the PyTorch module's forward hook only detaches the stored
    # activation (autograd bookkeeping); it has no JAX equivalent/needed here.
    return y, new_activation


def _reference(x, activation=None, n_cumulated_values: int = 0):
    """Pure-JAX reference of the PyTorch forward."""
    cs = jnp.cumsum(x.astype(jnp.float32), axis=2)
    if activation is not None:
        cs = cs + activation.astype(jnp.float32)
    T = x.shape[2]
    div = (n_cumulated_values
           + jnp.arange(1, T + 1, dtype=jnp.float32))[None, None, :, None, None]
    return (cs / div).astype(x.dtype)


if __name__ == "__main__":
    key = jax.random.PRNGKey(0)
    k1, k2, k3 = jax.random.split(key, 3)

    # 1) Fresh call (activation is None, n_cumulated_values == 0), default tiling.
    x = jax.random.normal(k1, (2, 4, 8, 16, 16), dtype=jnp.float32)
    y, act = temporal_cg_avg_pool_3d(x)
    y = jax.block_until_ready(y)
    np.testing.assert_allclose(np.asarray(y), np.asarray(_reference(x)),
                               rtol=1e-5, atol=1e-5)
    np.testing.assert_allclose(np.asarray(act),
                               np.asarray(jnp.cumsum(x, axis=2)[:, :, -1:]),
                               rtol=1e-5, atol=1e-5)
    assert y.shape == (2, 4, 8, 16, 16) and act.shape == (2, 4, 1, 16, 16)

    # 2) Stateful chunked call (carrying activation + n_cumulated_values across
    #    calls must equal one call on the full clip), with a small target block
    #    that forces a multi-block, ragged batch grid (B=20, tb=3 -> partial
    #    last block whose out-of-range writes Pallas drops; no padding/slicing).
    x_full = jax.random.normal(k2, (4, 5, 16, 14, 14), dtype=jnp.float32)
    x_a, x_b = x_full[:, :, :8], x_full[:, :, 8:]
    small_blk = 20_000
    y_a, act_a = temporal_cg_avg_pool_3d(x_a, target_block_bytes=small_blk)
    y_b, _ = temporal_cg_avg_pool_3d(x_b, activation=act_a,
                                     n_cumulated_values=8,
                                     target_block_bytes=small_blk)
    y_chunked = jax.block_until_ready(jnp.concatenate([y_a, y_b], axis=2))
    np.testing.assert_allclose(np.asarray(y_chunked),
                               np.asarray(_reference(x_full)),
                               rtol=1e-5, atol=1e-5)

    # 3) Large-spatial path: S split across the second (parallel) grid axis
    #    in 128-lane multiples.
    x3 = jax.random.normal(k3, (1, 2, 4, 32, 32), dtype=jnp.float32)
    y3, _ = temporal_cg_avg_pool_3d(x3, target_block_bytes=8 * 1024)
    y3 = jax.block_until_ready(y3)
    np.testing.assert_allclose(np.asarray(y3), np.asarray(_reference(x3)),
                               rtol=1e-5, atol=1e-5)

    print("KERNEL_OK")
</pallas_src>

<mosaic_0001>
module attributes {stable_mosaic.version = 11 : i64} {
  func.func @_temporal_cg_avg_pool_kernel(%arg0: i32, %arg1: i32, %arg2: memref<1x1x256xf32, #tpu.memory_space<vmem>>, %arg3: memref<1x8x256xf32, #tpu.memory_space<vmem>>, %arg4: memref<1x8x256xf32, #tpu.memory_space<vmem>>, %arg5: memref<1x1x256xf32, #tpu.memory_space<vmem>>) attributes {dimension_semantics = [#tpu.dimension_semantics<parallel>, #tpu.dimension_semantics<parallel>], iteration_bounds = array<i64: 8, 1>, scalar_prefetch = 0 : i64, scratch_operands = 0 : i64, tpu.core_type = #tpu.core_type<tc>, window_params = [{transform_indices = @transform_0, window_bounds = array<i64: 1, 1, 256>}, {transform_indices = @transform_1, window_bounds = array<i64: 1, 8, 256>}, {transform_indices = @transform_2, window_bounds = array<i64: 1, 8, 256>}, {transform_indices = @transform_3, window_bounds = array<i64: 1, 1, 256>}]} {
    %c0 = arith.constant 0 : index
    %c0_0 = arith.constant 0 : index
    %c0_1 = arith.constant 0 : index
    %0 = vector.load %arg3[%c0, %c0_0, %c0_1] : memref<1x8x256xf32, #tpu.memory_space<vmem>>, vector<1x8x256xf32>
    %1 = tpu.iota {dimensions = array<i32: 1>} : vector<1x8x1xi32>
    %c1_i32 = arith.constant 1 : i32
    %2 = vector.broadcast %c1_i32 : i32 to vector<1x8x1xi32>
    %3 = arith.cmpi sge, %1, %2 : vector<1x8x1xi32>
    %4 = arith.extui %3 : vector<1x8x1xi1> to vector<1x8x1xi32>
    %5 = arith.sitofp %4 : vector<1x8x1xi32> to vector<1x8x1xf32>
    %c1_i32_2 = arith.constant 1 : i32
    %6 = tpu.dynamic_rotate %0 by %c1_i32_2 dim 1 : vector<1x8x256xf32>, i32 -> vector<1x8x256xf32>
    %7 = vector.broadcast %5 : vector<1x8x1xf32> to vector<1x8x256xf32>
    %8 = arith.mulf %6, %7 : vector<1x8x256xf32>
    %9 = arith.addf %0, %8 : vector<1x8x256xf32>
    %c2_i32 = arith.constant 2 : i32
    %10 = vector.broadcast %c2_i32 : i32 to vector<1x8x1xi32>
    %11 = arith.cmpi sge, %1, %10 : vector<1x8x1xi32>
    %12 = arith.extui %11 : vector<1x8x1xi1> to vector<1x8x1xi32>
    %13 = arith.sitofp %12 : vector<1x8x1xi32> to vector<1x8x1xf32>
    %c2_i32_3 = arith.constant 2 : i32
    %14 = tpu.dynamic_rotate %9 by %c2_i32_3 dim 1 : vector<1x8x256xf32>, i32 -> vector<1x8x256xf32>
    %15 = vector.broadcast %13 : vector<1x8x1xf32> to vector<1x8x256xf32>
    %16 = arith.mulf %14, %15 : vector<1x8x256xf32>
    %17 = arith.addf %9, %16 : vector<1x8x256xf32>
    %c4_i32 = arith.constant 4 : i32
    %18 = vector.broadcast %c4_i32 : i32 to vector<1x8x1xi32>
    %19 = arith.cmpi sge, %1, %18 : vector<1x8x1xi32>
    %20 = arith.extui %19 : vector<1x8x1xi1> to vector<1x8x1xi32>
    %21 = arith.sitofp %20 : vector<1x8x1xi32> to vector<1x8x1xf32>
    %c4_i32_4 = arith.constant 4 : i32
    %22 = tpu.dynamic_rotate %17 by %c4_i32_4 dim 1 : vector<1x8x256xf32>, i32 -> vector<1x8x256xf32>
    %23 = vector.broadcast %21 : vector<1x8x1xf32> to vector<1x8x256xf32>
    %24 = arith.mulf %22, %23 : vector<1x8x256xf32>
    %25 = arith.addf %17, %24 : vector<1x8x256xf32>
    %c0_5 = arith.constant 0 : index
    %c0_6 = arith.constant 0 : index
    %c0_7 = arith.constant 0 : index
    %26 = vector.load %arg2[%c0_5, %c0_6, %c0_7] : memref<1x1x256xf32, #tpu.memory_space<vmem>>, vector<1x1x256xf32>
    %27 = vector.broadcast %26 : vector<1x1x256xf32> to vector<1x8x256xf32>
    %28 = arith.addf %25, %27 : vector<1x8x256xf32>
    %29 = arith.sitofp %1 : vector<1x8x1xi32> to vector<1x8x1xf32>
    %cst = arith.constant 1.000000e+00 : f32
    %30 = vector.broadcast %cst : f32 to vector<1x8x1xf32>
    %31 = arith.addf %29, %30 : vector<1x8x1xf32>
    %cst_8 = arith.constant 1.000000e+00 : f32
    %32 = vector.broadcast %cst_8 : f32 to vector<1x8x1xf32>
    %33 = arith.divf %32, %31 : vector<1x8x1xf32>
    %34 = vector.broadcast %33 : vector<1x8x1xf32> to vector<1x8x256xf32>
    %35 = arith.mulf %28, %34 : vector<1x8x256xf32>
    %c0_9 = arith.constant 0 : index
    %c0_10 = arith.constant 0 : index
    %c0_11 = arith.constant 0 : index
    %36 = vector.load %arg4[%c0_9, %c0_10, %c0_11] : memref<1x8x256xf32, #tpu.memory_space<vmem>>, vector<1x8x256xf32>
    tpu.vector_store %arg4[%c0_9, %c0_10, %c0_11], %35 {strides = array<i32>} : memref<1x8x256xf32, #tpu.memory_space<vmem>>, vector<1x8x256xf32>,
    %37 = vector.extract_strided_slice %28 {offsets = [0, 7, 0], sizes = [1, 1, 256], strides = [1, 1, 1]} : vector<1x8x256xf32> to vector<1x1x256xf32>
    %c0_12 = arith.constant 0 : index
    %c0_13 = arith.constant 0 : index
    %c0_14 = arith.constant 0 : index
    %38 = vector.load %arg5[%c0_12, %c0_13, %c0_14] : memref<1x1x256xf32, #tpu.memory_space<vmem>>, vector<1x1x256xf32>
    tpu.vector_store %arg5[%c0_12, %c0_13, %c0_14], %37 {strides = array<i32>} : memref<1x1x256xf32, #tpu.memory_space<vmem>>, vector<1x1x256xf32>,
    return
  }
  func.func @transform_0(%arg0: i32, %arg1: i32) -> (i32, i32, i32) {
    %c0_i32 = arith.constant 0 : i32
    %c0_i32_0 = arith.constant 0 : i32
    return %arg0, %c0_i32, %arg1 : i32, i32, i32
  }
  func.func @transform_1(%arg0: i32, %arg1: i32) -> (i32, i32, i32) {
    %c0_i32 = arith.constant 0 : i32
    %c0_i32_0 = arith.constant 0 : i32
    return %arg0, %c0_i32, %arg1 : i32, i32, i32
  }
  func.func @transform_2(%arg0: i32, %arg1: i32) -> (i32, i32, i32) {
    %c0_i32 = arith.constant 0 : i32
    %c0_i32_0 = arith.constant 0 : i32
    return %arg0, %c0_i32, %arg1 : i32, i32, i32
  }
  func.func @transform_3(%arg0: i32, %arg1: i32) -> (i32, i32, i32) {
    %c0_i32 = arith.constant 0 : i32
    %c0_i32_0 = arith.constant 0 : i32
    return %arg0, %c0_i32, %arg1 : i32, i32, i32
  }
}

</mosaic_0001>

<bundles_post_ra>
// kernel: tpu_custom_call.1
= control target key start
LH: loop header
LB: loop body
LE: loop exit
PB: predicated region body
PF: predicated region fallthrough
CT: control target
= control target key end

     0   :  { %9 = vsyncpa [#allocation3], 0  ;;  %s989_s0 = inlined_call_operand.hbm [shape: f32[8,1,256], index: 0, kind: input, shape index: {}]   ;;  %s990_s1 = inlined_call_operand.hbm [shape: f32[8,8,256], index: 1, kind: input, shape index: {}]   ;;  %s991_s2 = inlined_call_operand.hbm [shape: f32[8,8,256], index: 2, kind: output, shape index: {0}]   ;;  %s992_s3 = inlined_call_operand.hbm [shape: f32[8,1,256], index: 3, kind: output, shape index: {1}]  }
   0x1   :  { %11 = vsyncpa [#allocation3 + $0x1], 0 }
   0x2   :  { %12 = vsyncpa [#allocation6], 0 }
   0x3   :  { %14 = vsyncpa [#allocation6 + $0x1], 0 }
   0x4   :  { %15 = vsyncpa [#allocation4], 0 }
   0x5   :  { %17 = vsyncpa [#allocation4 + $0x1], 0 }
   0x6   :  { %18 = vsyncpa [#allocation9], 0 }
   0x7   :  { %20 = vsyncpa [#allocation9 + $0x1], 0  ;;  %s825_s12 = smov 0   ;;  %s827_s13 = smov 0  }
   0x8   :  { %s829_s14 = smov 0   ;;  %s831_s15 = smov 0  }
   0x9   :  { %s833_s16 = smov 0   ;;  %s835_s17 = smov 0  }
   0xa LB: > { %s523_s18 = sadd.s32 4294967295, %s802_s17   ;;  %s524_s19 = sadd.s32 4294967294, %s802_s17   ;;  %s802_s17 = sphi %s835_s17, %s26_s17   ;;  %s798_s16 = sphi %s833_s16, %s1002_s16   ;;  %s794_s15 = sphi %s831_s15, %s1001_s15   ;;  %s790_s14 = sphi %s829_s14, %s1000_s14   ;;  %s786_s13 = sphi %s827_s13, %s999_s13   ;;  %s782_s12 = sphi %s825_s12, %s998_s12  }
   0xb   : > { %s38_s20 = sadd.s32 1, %s798_s16  ;;  %s47_s21 = sadd.s32 1, %s790_s14 }
   0xc   : > { %p40_p0 = scmp.ge.s32.totalorder %s38_s20, 8  ;;  %p54_p1 = scmp.ne.s32.totalorder %s790_s14, %s786_s13 }
   0xd   : > { %p55_p2 = scmp.eq.s32.totalorder %s802_s17, 0  ;;  %p60_p3 = scmp.ne.s32.totalorder %s786_s13, %s782_s12 }
   0xe   : > { %s1004_s20 = smov (%p40_p0, %s38_s20), 0  ;;  %p61_p5 = scmp.eq.s32.totalorder %s523_s18, 0 }
   0xf   : > { %p866_p4 = por %p55_p2, %p54_p1  ;;  %s42_s23 = ssub.s32 %s798_s16, %s1004_s20 }
  0x10   : > { %p114_p6 = scmp.eq.s32.totalorder %s523_s18, 7  ;;  %p45_p7 = scmp.eq.s32.totalorder %s42_s23, 0 }
  0x11   : > { %p872_p8 = por %p61_p5, %p60_p3  ;;  %p120_p10 = scmp.eq.s32.totalorder %s524_s19, 7 }
  0x12   : > { %p876_p9 = por %p114_p6, %p54_p1  ;;  %p571_p12 = scmp.lt.s32.totalorder %s802_s17, 8 }
  0x13   : > { %s881_s26 = scalar_select %p45_p7, %s790_s14, %s47_s21  }
  0x14   : > { %p883_p11 = por %p120_p10, %p60_p3  ;;  %s168_s28 = sand.u32 1, %s790_s14  }
  0x15   : > { %s527_s29 = sshll.u32 %s168_s28, 1  ;;  %s528_s30 = sshll.u32 %s798_s16, 1 }
  0x16   : > { %s178_s6 = scalar_lea.hbm %s989_s0, %s528_s30  ;;  %s172_s7 = scalar_lea.vmem [#allocation2], %s527_s29 }
  0x17   : > { %s182_s8 = sshll.u32 %s172_s7, 4  ;;  %s180_s9 = sshll.u32 %s178_s6, 4  ;;  %s183_s8 = int_to_ptr.vmem [resolvable:$true] %s182_s8  ;;  %s181_s9 = int_to_ptr.hbm [resolvable:$true] %s180_s9 }
  0x18   : > { %p895_p13 = pnand %p571_p12, %p866_p4  ;;  %p532_p0 = scmp.ge.s32.totalorder %s802_s17, 1 }
  0x19   : > { %p209_p1 = scmp.lt.s32.totalorder %s802_s17, 9  ;;  %s169_s11 = scalar_lea.sflag [#allocation3], %s168_s28 }
  0x1a   : > { %560 = dma.hbm_to_vmem [thread:$0]  (!%p895_p13), %s181_s9, 32, %s183_s8, %s169_s11  }
  0x1b   : > { %p210_p2 = pnand %p532_p0, %p209_p1  ;;  %s529_s18 = sshll.u32 %s168_s28, 4 }
  0x1c   : > { %s547_s19 = sshll.u32 %s798_s16, 4  ;;  %s193_s30 = scalar_lea.vmem [#allocation5], %s529_s18 }
  0x1d   : > { %s200_s29 = scalar_lea.hbm %s990_s1, %s547_s19  ;;  %s204_s22 = sshll.u32 %s193_s30, 4  ;;  %s205_s22 = int_to_ptr.vmem [resolvable:$true] %s204_s22 }
  0x1e   : > { %s202_s4 = sshll.u32 %s200_s29, 4  ;;  %s190_s5 = scalar_lea.sflag [#allocation6], %s168_s28  ;;  %s203_s4 = int_to_ptr.hbm [resolvable:$true] %s202_s4 }
  0x1f   : > { %563 = dma.hbm_to_vmem [thread:$0]  (!%p895_p13), %s203_s4, 256, %s205_s22, %s190_s5  }
  0x20   : > { %213 = sbr.rel (%p210_p2) target bundleno = 84 (0x54), region = 28  ;;  %s910_s6 = sand.u32 (!%p210_p2), 1, %s786_s13  }
  0x21   : > { %s533_s7 = sshll.u32 (!%p210_p2), %s910_s6, 1  ;;  %s216_s8 = scalar_lea.sflag (!%p210_p2), [#allocation3], %s910_s6 }
  0x22   : > { %s916_s9 = scalar_lea.vmem (!%p210_p2), [#allocation2], %s533_s7 }
  0x25   : > { %765 = dma.done.wait (%p872_p8), %s216_s8, 32  }
  0x26   : > { %767 = vsyncadd (%p872_p8), %s216_s8, 4294967264  ;;  %s534_s28 = sshll.u32 %s910_s6, 4  ;;  %s226_s10 = scalar_lea.sflag [#allocation6], %s910_s6 }
  0x27   : > { %s229_s11 = scalar_lea.vmem [#allocation5], %s534_s28 }
  0x28   : > { %769 = dma.done.wait (%p872_p8), %s226_s10, 256  }
  0x29   : > { %771 = vsyncadd (%p872_p8), %s226_s10, 4294967040  ;;  %v269_v0 = vlaneseq  ;;  %v267_v4 = vld [vmem:[%s229_s11] sm:$0xff]  ;;  %v804_v5 = vmov 0.0   ;;  %v268_v7 = vld [vmem:[%s229_s11 + $0x8] sm:$0xff]  ;;  %s548_s24 = sshll.u32 %s794_s15, 4  ;;  %s255_s23 = scalar_lea.vmem [#allocation7], %s534_s28 }
  0x2a   : > { %v274_v8 = vrot.slane %v267_v4, 7  ;;  %v275_v9 = vrot.slane %v268_v7, 7  ;;  %v298_v26 = vld [vmem:[%s916_s9] sm:$0x3]  ;;  %s358_s21 = scalar_lea.hbm %s991_s2, %s548_s24  ;;  %s360_s29 = sshll.u32 %s255_s23, 4  ;;  %s361_s29 = int_to_ptr.vmem [resolvable:$true] %s360_s29 }
  0x2b   : > { %v270_v1 = vshrl.u32 %v269_v0, 7  ;;  %v300_v34 = vperm.slane %v298_v26, 0  ;;  %v301_v37 = vperm.slane %v298_v26, 1  ;;  %s544_s30 = sshll.u32 %s794_s15, 1  ;;  %s362_s22 = sshll.u32 %s358_s21, 4  ;;  %s363_s22 = int_to_ptr.hbm [resolvable:$true] %s362_s22 }
  0x2c   : > { %s374_s8 = scalar_lea.hbm %s992_s3, %s544_s30  ;;  %s262_s9 = scalar_lea.vmem [#allocation8], %s533_s7 }
  0x2d   : > { %vm271_vm0 = vcmp.ge.s32.totalorder %v270_v1, 1  ;;  %v306_v2 = vcvt.s32.f32 %v270_v1  ;;  %vm280_vm1 = vcmp.ge.s32.totalorder %v270_v1, 2  ;;  %vm289_vm2 = vcmp.ge.s32.totalorder %v270_v1, 4  ;;  %s376_s15 = sshll.u32 %s262_s9, 4  ;;  %s378_s28 = sshll.u32 %s374_s8, 4  ;;  %s377_s15 = int_to_ptr.vmem [resolvable:$true] %s376_s15  ;;  %s379_s28 = int_to_ptr.hbm [resolvable:$true] %s378_s28 }
  0x2e   : > { %v537_v6 = vsel %vm271_vm0, 1.0, %v804_v5  ;;  %v538_v13 = vsel %vm280_vm1, 1.0, %v804_v5  ;;  %v539_v25 = vsel %vm289_vm2, 1.0, %v804_v5  ;;  %s340_s10 = scalar_lea.sflag [#allocation4], %s910_s6  ;;  %s698_s11 = sshra.s32 %s363_s22, 4  ;;  %s699_s11 = int_to_ptr.hbm [resolvable:$true] %s698_s11 }
  0x2f   : > { %v307_v3 = vadd.f32 1.0, %v306_v2  ;;  %v276_v10 = vmul.f32 %v537_v6, %v274_v8  ;;  %v277_v11 = vmul.f32 %v537_v6, %v275_v9  ;;  %s700_s24 = scalar_lea.hbm %s699_s11, 16  ;;  %s704_s21 = scalar_lea.hbm %s991_s2, 128 }
  0x30   : > { %p701_p3 = scmp.ne.s32.totalorder %s699_s11, %s700_s24  ;;  %p705_p6 = scmp.lt.s32.totalorder %s699_s11, %s991_s2 }
  0x31   : > { %622 = vrcp.f32 %v307_v3  ;;  %v278_v12 = vadd.f32 %v276_v10, %v267_v4  ;;  %v279_v14 = vadd.f32 %v277_v11, %v268_v7  ;;  %vm313_vm3 = vweird.f32 %v307_v3  ;;  %p706_p7 = scmp.lt.s32.totalorder %s704_s21, %s700_s24 }
  0x32   : > { %v319_v21 = vand.u32 2147483648, %v307_v3  ;;  %v317_v24 = vand.u32 2147483647, %v307_v3  ;;  %p702_p4 = pnand %p701_p3, %p876_p9 }
  0x33   : > { %v283_v16 = vrot.slane %v278_v12, 6  ;;  %v284_v18 = vrot.slane %v279_v14, 6  ;;  %p707_p8 = por %p706_p7, %p705_p6 }
  0x34   : > { %v320_v31 = vor.u32 1.1754944e-38, %v319_v21  ;;  %vm318_vm6 = vcmp.eq.f32.partialorder %v317_v24, 8.507059e+37  ;;  %p703_p5 = pneg %p702_p4 }
  0x35   : > { %v285_v19 = vmul.f32 %v538_v13, %v283_v16  ;;  %v286_v22 = vmul.f32 %v538_v13, %v284_v18 }
  0x36   : > { %p708_p10 = pnand %p707_p8, %p703_p5 }
  0x37   : > { %v623_v15 = vpop.eup %622  ;;  %v287_v23 = vadd.f32 %v285_v19, %v278_v12  ;;  %v288_v28 = vadd.f32 %v286_v22, %v279_v14 }
  0x38   : > { %v309_v17 = vmul.f32 %v623_v15, %v307_v3  ;;  %vm314_vm4 = vweird.f32 %v623_v15 }
  0x39   : > { %v292_v29 = vrot.slane %v287_v23, 4  ;;  %vm315_vm5 = vmor %vm313_vm3, %vm314_vm4  ;;  %v293_v32 = vrot.slane %v288_v28, 4 }
  0x3a   : > { %v310_v20 = vsub.f32 1.0, %v309_v17 }
  0x3b   : > { %v294_v33 = vmul.f32 %v539_v25, %v292_v29  ;;  %v295_v36 = vmul.f32 %v539_v25, %v293_v32 }
  0x3c   : > { %v311_v27 = vmul.f32 %v623_v15, %v310_v20 }
  0x3d   : > { %v296_v38 = vadd.f32 %v294_v33, %v287_v23  ;;  %v297_v40 = vadd.f32 %v295_v36, %v288_v28 }
  0x3e   : > { %v312_v30 = vadd.f32 %v623_v15, %v311_v27 }
  0x3f   : > { %v304_v41 = vadd.f32 %v300_v34, %v296_v38  ;;  %v305_v42 = vadd.f32 %v301_v37, %v297_v40 }
  0x40   : > { %v316_v35 = vsel %vm315_vm5, %v623_v15, %v312_v30 }
  0x41   : > { %v321_v39 = vsel %vm318_vm6, %v320_v31, %v316_v35  ;;  %329 = vst [vmem:[#allocation1] sm:$0xff] %v304_v41 }
  0x42   : > { %v323_v43 = vmul.f32 %v321_v39, %v304_v41  ;;  %v324_v44 = vmul.f32 %v321_v39, %v305_v42  ;;  %330 = vst [vmem:[#allocation1 + $0x9] sm:$0xff] %v305_v42 }
  0x44   : > { %325 = vst [vmem:[%s255_s23] sm:$0xff] %v323_v43 }
  0x45   : > { %326 = vst [vmem:[%s255_s23 + $0x8] sm:$0xff] %v324_v44 }
  0x46   : > { %711 = shalt.err (!%p708_p10)
}
  0x47   : > { %553 = dma.vmem_to_hbm [thread:$0]  (%p876_p9), %s361_s29, 256, %s363_s22, %s340_s10   ;;  %vm336_vm7 = vcmp.lt.s32.totalorder %v269_v0, 256 }
  0x48   : > { %s345_s7 = scalar_lea.sflag [#allocation9], %s910_s6  ;;  %s726_s23 = sshra.s32 %s379_s28, 4  ;;  %s727_s23 = int_to_ptr.hbm [resolvable:$true] %s726_s23 }
  0x49   : > { %v332_v45 = vld [vmem:[#allocation1 + $0x7] ss:$9 sm:$0xff]  ;;  %s728_s5 = scalar_lea.hbm %s727_s23, 2  ;;  %s732_s24 = scalar_lea.hbm %s992_s3, 16 }
  0x4a   : > { %338 = vst.msk [vmem:[%s262_s9] sm:$0x3] %vm336_vm7, %v332_v45  ;;  %p729_p12 = scmp.ne.s32.totalorder %s727_s23, %s728_s5  ;;  %p733_p1 = scmp.lt.s32.totalorder %s727_s23, %s992_s3 }
  0x4b   : > { %p734_p2 = scmp.lt.s32.totalorder %s732_s24, %s728_s5 }
  0x4c   : > { %p730_p13 = pnand %p729_p12, %p876_p9 }
  0x4d   : > { %p735_p3 = por %p734_p2, %p733_p1 }
  0x4e   : > { %p731_p0 = pneg %p730_p13 }
  0x50   : > { %p736_p4 = pnand %p735_p3, %p731_p0 }
  0x52   : > { %739 = shalt.err (!%p736_p4)
}
  0x53   : > { %554 = dma.vmem_to_hbm [thread:$0]  (%p876_p9), %s377_s15, 32, %s379_s28, %s345_s7  }
  0x54 PF: > { %p572_p5 = scmp.ge.s32.totalorder %s802_s17, 2  ;;  %s390_s6 = sand.u32 1, %s782_s12  }
  0x55   : > { %s391_s22 = scalar_lea.sflag [#allocation4], %s390_s6 }
  0x56   : > { %p565_p6 = pnand %p572_p5, %p883_p11 }
  0x58   : > { %p566_p7 = pneg %p565_p6 }
  0x5a   : > { %773 = dma.done.wait (%p566_p7), %s391_s22, 256  }
  0x5b   : > { %775 = vsyncadd (%p566_p7), %s391_s22, 4294967040  ;;  %s401_s9 = scalar_lea.sflag [#allocation9], %s390_s6 }
  0x5c   : > { %777 = dma.done.wait (%p566_p7), %s401_s9, 32  }
  0x5d   : > { %779 = vsyncadd (%p566_p7), %s401_s9, 4294967264  ;;  %s26_s17 = sadd.s32 1, %s802_s17   ;;  %s998_s12 = smov %s786_s13 }
  0x5e   : > { %p23_p8 = scmp.ge.s32.totalorder %s26_s17, 10   ;;  %s999_s13 = smov %s790_s14 }
  0x5f   : > { %s1000_s14 = smov %s881_s26  ;;  %s1001_s15 = smov %s798_s16 }
  0x60   : > { %s1002_s16 = smov %s1004_s20  ;;  %25 = sbr.rel (!%p23_p8) target bundleno = 10 (0xa), region = 104 }
  0x65   :  { %407 = vsyncpa [#allocation3], 1 }
  0x66   :  { %409 = vsyncpa [#allocation3 + $0x1], 1 }
  0x67   :  { %410 = vsyncpa [#allocation6], 1 }
  0x68   :  { %412 = vsyncpa [#allocation6 + $0x1], 1 }
  0x69   :  { %413 = vsyncpa [#allocation4], 1 }
  0x6a   :  { %415 = vsyncpa [#allocation4 + $0x1], 1 }
  0x6b   :  { %416 = vsyncpa [#allocation9], 1 }
  0x6c   :  { %418 = vsyncpa [#allocation9 + $0x1], 1 }

</bundles_post_ra>
